<compile_context>
chip_gen: v6e
topology: v6e:2x2x1
jax: 0.10.0
libtpu: 0.0.40
codegen_flags: <defaults>
</compile_context>

<pallas_src>
import math

import jax
import jax.numpy as jnp
from jax import lax
from jax.experimental import pallas as pl
from jax.experimental.pallas import tpu as pltpu

_LANE = 128
_INV_SQRT2 = 1.0 / math.sqrt(2.0)


def _gelu_exact(x):
    # torch.nn.GELU default: 0.5 * x * (1 + erf(x / sqrt(2)))
    return 0.5 * x * (1.0 + lax.erf(x * _INV_SQRT2))


def _head_kernel(x_ref,
                 wp_ref, bp_ref,      # pooler linear
                 w1_ref, b1_ref,      # net linear 1
                 w2_ref, b2_ref,      # net linear 2
                 w3_ref, b3_ref,      # net linear 3 (projection, lane-padded)
                 out_ref):
    # Matmuls feed the MXU in bf16 (native MXU dtype, half the HBM/VMEM bytes)
    # with f32 accumulation; bias adds and nonlinearities stay in f32.
    x = x_ref[...]

    # pooler: Linear -> Tanh -> Dropout(identity)
    h = jnp.dot(x.astype(jnp.bfloat16), wp_ref[...],
                preferred_element_type=jnp.float32) + bp_ref[...]
    h = jnp.tanh(h)

    # net: Linear -> GELU -> Dropout -> Linear -> GELU -> Dropout -> Linear
    h = jnp.dot(h.astype(jnp.bfloat16), w1_ref[...],
                preferred_element_type=jnp.float32) + b1_ref[...]
    h = _gelu_exact(h)

    h = jnp.dot(h.astype(jnp.bfloat16), w2_ref[...],
                preferred_element_type=jnp.float32) + b2_ref[...]
    h = _gelu_exact(h)

    out = jnp.dot(h.astype(jnp.bfloat16), w3_ref[...],
                  preferred_element_type=jnp.float32) + b3_ref[...]
    out_ref[...] = out.astype(out_ref.dtype)


def _choose_tile_b(B):
    if B <= 256:
        # Small batch: one tile (block == full array dim, so no (8,128) issue).
        return B
    # Large batch: 256-row tiles -> weights stay resident in VMEM, grid >= 2 so
    # x/out DMAs pipeline with compute and both TensorCores (v7x) get work.
    return 256


def prepare_params(raw):
    """Convert torch.nn.Linear-layout params (weight [out,in], bias [out]) to
    kernel layout: [in,out] bf16 weights, [1,out] f32 biases, classifier
    weight/bias zero-padded on the label axis to a lane-dense width (128)."""
    H = raw["wp"].shape[1]
    L = raw["w3"].shape[0]
    L_pad = max(_LANE, ((L + _LANE - 1) // _LANE) * _LANE)

    def w_t(w):
        return jnp.asarray(w, jnp.float32).T.astype(jnp.bfloat16)

    def b_row(b):
        return jnp.asarray(b, jnp.float32).reshape(1, -1)

    w3 = jnp.zeros((H, L_pad), jnp.bfloat16).at[:, :L].set(w_t(raw["w3"]))
    b3 = jnp.zeros((1, L_pad), jnp.float32).at[:, :L].set(b_row(raw["b3"]))

    return {
        "wp": w_t(raw["wp"]), "bp": b_row(raw["bp"]),
        "w1": w_t(raw["w1"]), "b1": b_row(raw["b1"]),
        "w2": w_t(raw["w2"]), "b2": b_row(raw["b2"]),
        "w3": w3, "b3": b3,
        "num_labels": L,
    }


def _build_specs(H, L_pad, tile_b, single_buffer):
    row_map = lambda i: (i, 0)

    def const_spec(shape):
        idx = lambda i: (0,) * len(shape)
        if single_buffer:
            # Grid-invariant block: resident across the grid; 1 buffer saves VMEM.
            return pl.BlockSpec(shape, idx, pipeline_mode=pl.Buffered(1))
        return pl.BlockSpec(shape, idx)

    in_specs = [
        pl.BlockSpec((tile_b, H), row_map),     # x tile (double-buffered)
        const_spec((H, H)),                     # wp
        const_spec((1, H)),                     # bp
        const_spec((H, H)),                     # w1
        const_spec((1, H)),                     # b1
        const_spec((H, H)),                     # w2
        const_spec((1, H)),                     # b2
        const_spec((H, L_pad)),                 # w3 (lane-padded)
        const_spec((1, L_pad)),                 # b3
    ]
    out_spec = pl.BlockSpec((tile_b, L_pad), row_map)  # lane-dense output slab
    return in_specs, out_spec


def _call_kernel(x, params, tile_b, single_buffer):
    B, H = x.shape
    L_pad = params["w3"].shape[1]
    grid = (pl.cdiv(B, tile_b),)

    in_specs, out_spec = _build_specs(H, L_pad, tile_b, single_buffer)

    weight_bytes = sum(params[k].size * params[k].dtype.itemsize
                       for k in ("wp", "bp", "w1", "b1", "w2", "b2", "w3", "b3"))
    cost = pl.CostEstimate(
        flops=2 * B * (3 * H * H + H * L_pad),
        transcendentals=3 * B * H,              # tanh + 2x erf
        bytes_accessed=x.size * x.dtype.itemsize
        + weight_bytes
        + B * L_pad * x.dtype.itemsize,
    )

    return pl.pallas_call(
        _head_kernel,
        out_shape=jax.ShapeDtypeStruct((B, L_pad), x.dtype),
        grid_spec=pltpu.PrefetchScalarGridSpec(
            num_scalar_prefetch=0,
            grid=grid,
            in_specs=in_specs,
            out_specs=out_spec,
        ),
        compiler_params=pltpu.CompilerParams(
            dimension_semantics=("parallel",),
            vmem_limit_bytes=48 * 1024 * 1024,
        ),
        cost_estimate=cost,
    )(x,
      params["wp"], params["bp"],
      params["w1"], params["b1"],
      params["w2"], params["b2"],
      params["w3"], params["b3"])


def roberta_classification_head(x, params, *, tile_b=None):
    """x: [B, H] float32. params: output of prepare_params()."""
    B, H = x.shape
    num_labels = params["num_labels"]
    if tile_b is None:
        tile_b = _choose_tile_b(B)

    try:
        out_padded = _call_kernel(x, params, tile_b, single_buffer=True)
        out_padded = jax.block_until_ready(out_padded)
    except Exception:
        # Installed Pallas rejected pipeline_mode / Buffered(1); default buffering.
        out_padded = _call_kernel(x, params, tile_b, single_buffer=False)

    return out_padded[:, :num_labels]


def init_raw_params(key, hidden_size, num_labels):
    """Deterministic synthetic init in torch.nn.Linear layout ([out,in] weights)."""
    ks = jax.random.split(key, 8)
    s = 1.0 / math.sqrt(hidden_size)
    u = lambda k, shape: jax.random.uniform(k, shape, jnp.float32, -s, s)
    return {
        "wp": u(ks[0], (hidden_size, hidden_size)), "bp": u(ks[1], (hidden_size,)),
        "w1": u(ks[2], (hidden_size, hidden_size)), "b1": u(ks[3], (hidden_size,)),
        "w2": u(ks[4], (hidden_size, hidden_size)), "b2": u(ks[5], (hidden_size,)),
        "w3": u(ks[6], (num_labels, hidden_size)), "b3": u(ks[7], (num_labels,)),
    }


def _reference(x, p):
    # Pure-JAX reference of the same forward: dropout = identity, exact GELU,
    # bf16 matmul inputs with f32 accumulation (same numerics as the kernel).
    def mm(a, w):
        return jnp.dot(a.astype(jnp.bfloat16), w, preferred_element_type=jnp.float32)

    h = jnp.tanh(mm(x, p["wp"]) + p["bp"])
    h = _gelu_exact(mm(h, p["w1"]) + p["b1"])
    h = _gelu_exact(mm(h, p["w2"]) + p["b2"])
    out = mm(h, p["w3"]) + p["b3"]
    return out[:, :p["num_labels"]]


if __name__ == "__main__":
    hidden_size = 32
    num_labels = 4
    batch = 8

    key = jax.random.PRNGKey(0)
    k_x, k_p = jax.random.split(key)
    x = jax.random.normal(k_x, (batch, hidden_size), jnp.float32)

    raw = init_raw_params(k_p, hidden_size, num_labels)
    params = prepare_params(raw)

    # TODO(synk): nn.Dropout is identity here (eval mode); training-mode dropout
    # masks are not implemented.
    out = roberta_classification_head(x, params)
    out = jax.block_until_ready(out)

    ref = _reference(x, params)
    assert out.shape == (batch, num_labels)
    assert jnp.allclose(out, ref, atol=1e-3, rtol=1e-3), "mismatch vs reference"

    print("KERNEL_OK")
</pallas_src>

<mosaic_0001>
module attributes {stable_mosaic.version = 11 : i64} {
  func.func @_head_kernel(%arg0: i32, %arg1: memref<8x32xf32, #tpu.memory_space<vmem>>, %arg2: memref<32x32xbf16, #tpu.memory_space<vmem>>, %arg3: memref<1x32xf32, #tpu.memory_space<vmem>>, %arg4: memref<32x32xbf16, #tpu.memory_space<vmem>>, %arg5: memref<1x32xf32, #tpu.memory_space<vmem>>, %arg6: memref<32x32xbf16, #tpu.memory_space<vmem>>, %arg7: memref<1x32xf32, #tpu.memory_space<vmem>>, %arg8: memref<32x128xbf16, #tpu.memory_space<vmem>>, %arg9: memref<1x128xf32, #tpu.memory_space<vmem>>, %arg10: memref<8x128xf32, #tpu.memory_space<vmem>>) attributes {dimension_semantics = [#tpu.dimension_semantics<parallel>], iteration_bounds = array<i64: 1>, scalar_prefetch = 0 : i64, scratch_operands = 0 : i64, tpu.core_type = #tpu.core_type<tc>, window_params = [{transform_indices = @transform_0, window_bounds = array<i64: 8, 32>}, {pipeline_mode = #tpu.pipeline_mode<synchronous>, transform_indices = @transform_1, window_bounds = array<i64: 32, 32>}, {pipeline_mode = #tpu.pipeline_mode<synchronous>, transform_indices = @transform_2, window_bounds = array<i64: 1, 32>}, {pipeline_mode = #tpu.pipeline_mode<synchronous>, transform_indices = @transform_3, window_bounds = array<i64: 32, 32>}, {pipeline_mode = #tpu.pipeline_mode<synchronous>, transform_indices = @transform_4, window_bounds = array<i64: 1, 32>}, {pipeline_mode = #tpu.pipeline_mode<synchronous>, transform_indices = @transform_5, window_bounds = array<i64: 32, 32>}, {pipeline_mode = #tpu.pipeline_mode<synchronous>, transform_indices = @transform_6, window_bounds = array<i64: 1, 32>}, {pipeline_mode = #tpu.pipeline_mode<synchronous>, transform_indices = @transform_7, window_bounds = array<i64: 32, 128>}, {pipeline_mode = #tpu.pipeline_mode<synchronous>, transform_indices = @transform_8, window_bounds = array<i64: 1, 128>}, {transform_indices = @transform_9, window_bounds = array<i64: 8, 128>}]} {
    %c0 = arith.constant 0 : index
    %c0_0 = arith.constant 0 : index
    %0 = vector.load %arg1[%c0, %c0_0] : memref<8x32xf32, #tpu.memory_space<vmem>>, vector<8x32xf32>
    %1 = arith.truncf %0 : vector<8x32xf32> to vector<8x32xbf16>
    %c0_1 = arith.constant 0 : index
    %c0_2 = arith.constant 0 : index
    %2 = vector.load %arg2[%c0_1, %c0_2] : memref<32x32xbf16, #tpu.memory_space<vmem>>, vector<32x32xbf16>
    %cst = arith.constant dense<0.000000e+00> : vector<8x32xf32>
    %3 = tpu.matmul %1, %2, %cst {dimension_numbers = #tpu.dot_dimension_numbers<[1], [0], [0], [1], [0, 0, 1, 1], [], []>} : vector<8x32xbf16>, vector<32x32xbf16>, vector<8x32xf32> -> vector<8x32xf32>
    %c0_3 = arith.constant 0 : index
    %c0_4 = arith.constant 0 : index
    %4 = vector.load %arg3[%c0_3, %c0_4] : memref<1x32xf32, #tpu.memory_space<vmem>>, vector<1x32xf32>
    %5 = vector.broadcast %4 : vector<1x32xf32> to vector<8x32xf32>
    %6 = arith.addf %3, %5 : vector<8x32xf32>
    %7 = math.tanh %6 : vector<8x32xf32>
    %8 = arith.truncf %7 : vector<8x32xf32> to vector<8x32xbf16>
    %c0_5 = arith.constant 0 : index
    %c0_6 = arith.constant 0 : index
    %9 = vector.load %arg4[%c0_5, %c0_6] : memref<32x32xbf16, #tpu.memory_space<vmem>>, vector<32x32xbf16>
    %cst_7 = arith.constant dense<0.000000e+00> : vector<8x32xf32>
    %10 = tpu.matmul %8, %9, %cst_7 {dimension_numbers = #tpu.dot_dimension_numbers<[1], [0], [0], [1], [0, 0, 1, 1], [], []>} : vector<8x32xbf16>, vector<32x32xbf16>, vector<8x32xf32> -> vector<8x32xf32>
    %c0_8 = arith.constant 0 : index
    %c0_9 = arith.constant 0 : index
    %11 = vector.load %arg5[%c0_8, %c0_9] : memref<1x32xf32, #tpu.memory_space<vmem>>, vector<1x32xf32>
    %12 = vector.broadcast %11 : vector<1x32xf32> to vector<8x32xf32>
    %13 = arith.addf %10, %12 : vector<8x32xf32>
    %cst_10 = arith.constant 5.000000e-01 : f32
    %14 = vector.broadcast %cst_10 : f32 to vector<8x32xf32>
    %15 = arith.mulf %14, %13 : vector<8x32xf32>
    %cst_11 = arith.constant 0.707106769 : f32
    %16 = vector.broadcast %cst_11 : f32 to vector<8x32xf32>
    %17 = arith.mulf %13, %16 : vector<8x32xf32>
    %18 = math.erf %17 : vector<8x32xf32>
    %cst_12 = arith.constant 1.000000e+00 : f32
    %19 = vector.broadcast %cst_12 : f32 to vector<8x32xf32>
    %20 = arith.addf %19, %18 : vector<8x32xf32>
    %21 = arith.mulf %15, %20 : vector<8x32xf32>
    %22 = arith.truncf %21 : vector<8x32xf32> to vector<8x32xbf16>
    %c0_13 = arith.constant 0 : index
    %c0_14 = arith.constant 0 : index
    %23 = vector.load %arg6[%c0_13, %c0_14] : memref<32x32xbf16, #tpu.memory_space<vmem>>, vector<32x32xbf16>
    %cst_15 = arith.constant dense<0.000000e+00> : vector<8x32xf32>
    %24 = tpu.matmul %22, %23, %cst_15 {dimension_numbers = #tpu.dot_dimension_numbers<[1], [0], [0], [1], [0, 0, 1, 1], [], []>} : vector<8x32xbf16>, vector<32x32xbf16>, vector<8x32xf32> -> vector<8x32xf32>
    %c0_16 = arith.constant 0 : index
    %c0_17 = arith.constant 0 : index
    %25 = vector.load %arg7[%c0_16, %c0_17] : memref<1x32xf32, #tpu.memory_space<vmem>>, vector<1x32xf32>
    %26 = vector.broadcast %25 : vector<1x32xf32> to vector<8x32xf32>
    %27 = arith.addf %24, %26 : vector<8x32xf32>
    %cst_18 = arith.constant 5.000000e-01 : f32
    %28 = vector.broadcast %cst_18 : f32 to vector<8x32xf32>
    %29 = arith.mulf %28, %27 : vector<8x32xf32>
    %cst_19 = arith.constant 0.707106769 : f32
    %30 = vector.broadcast %cst_19 : f32 to vector<8x32xf32>
    %31 = arith.mulf %27, %30 : vector<8x32xf32>
    %32 = math.erf %31 : vector<8x32xf32>
    %cst_20 = arith.constant 1.000000e+00 : f32
    %33 = vector.broadcast %cst_20 : f32 to vector<8x32xf32>
    %34 = arith.addf %33, %32 : vector<8x32xf32>
    %35 = arith.mulf %29, %34 : vector<8x32xf32>
    %36 = arith.truncf %35 : vector<8x32xf32> to vector<8x32xbf16>
    %c0_21 = arith.constant 0 : index
    %c0_22 = arith.constant 0 : index
    %37 = vector.load %arg8[%c0_21, %c0_22] : memref<32x128xbf16, #tpu.memory_space<vmem>>, vector<32x128xbf16>
    %cst_23 = arith.constant dense<0.000000e+00> : vector<8x128xf32>
    %38 = tpu.matmul %36, %37, %cst_23 {dimension_numbers = #tpu.dot_dimension_numbers<[1], [0], [0], [1], [0, 0, 1, 1], [], []>} : vector<8x32xbf16>, vector<32x128xbf16>, vector<8x128xf32> -> vector<8x128xf32>
    %c0_24 = arith.constant 0 : index
    %c0_25 = arith.constant 0 : index
    %39 = vector.load %arg9[%c0_24, %c0_25] : memref<1x128xf32, #tpu.memory_space<vmem>>, vector<1x128xf32>
    %40 = vector.broadcast %39 : vector<1x128xf32> to vector<8x128xf32>
    %41 = arith.addf %38, %40 : vector<8x128xf32>
    %c0_26 = arith.constant 0 : index
    %c0_27 = arith.constant 0 : index
    %42 = vector.load %arg10[%c0_26, %c0_27] : memref<8x128xf32, #tpu.memory_space<vmem>>, vector<8x128xf32>
    tpu.vector_store %arg10[%c0_26, %c0_27], %41 {strides = array<i32>} : memref<8x128xf32, #tpu.memory_space<vmem>>, vector<8x128xf32>,
    return
  }
  func.func @transform_0(%arg0: i32) -> (i32, i32) {
    %c0_i32 = arith.constant 0 : i32
    %c0_i32_0 = arith.constant 0 : i32
    return %arg0, %c0_i32 : i32, i32
  }
  func.func @transform_1(%arg0: i32) -> (i32, i32) {
    %c0_i32 = arith.constant 0 : i32
    %c0_i32_0 = arith.constant 0 : i32
    %c0_i32_1 = arith.constant 0 : i32
    return %c0_i32, %c0_i32_0 : i32, i32
  }
  func.func @transform_2(%arg0: i32) -> (i32, i32) {
    %c0_i32 = arith.constant 0 : i32
    %c0_i32_0 = arith.constant 0 : i32
    %c0_i32_1 = arith.constant 0 : i32
    return %c0_i32, %c0_i32_0 : i32, i32
  }
  func.func @transform_3(%arg0: i32) -> (i32, i32) {
    %c0_i32 = arith.constant 0 : i32
    %c0_i32_0 = arith.constant 0 : i32
    %c0_i32_1 = arith.constant 0 : i32
    return %c0_i32, %c0_i32_0 : i32, i32
  }
  func.func @transform_4(%arg0: i32) -> (i32, i32) {
    %c0_i32 = arith.constant 0 : i32
    %c0_i32_0 = arith.constant 0 : i32
    %c0_i32_1 = arith.constant 0 : i32
    return %c0_i32, %c0_i32_0 : i32, i32
  }
  func.func @transform_5(%arg0: i32) -> (i32, i32) {
    %c0_i32 = arith.constant 0 : i32
    %c0_i32_0 = arith.constant 0 : i32
    %c0_i32_1 = arith.constant 0 : i32
    return %c0_i32, %c0_i32_0 : i32, i32
  }
  func.func @transform_6(%arg0: i32) -> (i32, i32) {
    %c0_i32 = arith.constant 0 : i32
    %c0_i32_0 = arith.constant 0 : i32
    %c0_i32_1 = arith.constant 0 : i32
    return %c0_i32, %c0_i32_0 : i32, i32
  }
  func.func @transform_7(%arg0: i32) -> (i32, i32) {
    %c0_i32 = arith.constant 0 : i32
    %c0_i32_0 = arith.constant 0 : i32
    %c0_i32_1 = arith.constant 0 : i32
    return %c0_i32, %c0_i32_0 : i32, i32
  }
  func.func @transform_8(%arg0: i32) -> (i32, i32) {
    %c0_i32 = arith.constant 0 : i32
    %c0_i32_0 = arith.constant 0 : i32
    %c0_i32_1 = arith.constant 0 : i32
    return %c0_i32, %c0_i32_0 : i32, i32
  }
  func.func @transform_9(%arg0: i32) -> (i32, i32) {
    %c0_i32 = arith.constant 0 : i32
    %c0_i32_0 = arith.constant 0 : i32
    return %arg0, %c0_i32 : i32, i32
  }
}

module attributes {stable_mosaic.version = 11 : i64} {
  func.func @_head_kernel(%arg0: i32, %arg1: memref<8x32xf32, #tpu.memory_space<vmem>>, %arg2: memref<32x32xbf16, #tpu.memory_space<vmem>>, %arg3: memref<1x32xf32, #tpu.memory_space<vmem>>, %arg4: memref<32x32xbf16, #tpu.memory_space<vmem>>, %arg5: memref<1x32xf32, #tpu.memory_space<vmem>>, %arg6: memref<32x32xbf16, #tpu.memory_space<vmem>>, %arg7: memref<1x32xf32, #tpu.memory_space<vmem>>, %arg8: memref<32x128xbf16, #tpu.memory_space<vmem>>, %arg9: memref<1x128xf32, #tpu.memory_space<vmem>>, %arg10: memref<8x128xf32, #tpu.memory_space<vmem>>) attributes {dimension_semantics = [#tpu.dimension_semantics<parallel>], iteration_bounds = array<i64: 1>, scalar_prefetch = 0 : i64, scratch_operands = 0 : i64, tpu.core_type = #tpu.core_type<tc>, window_params = [{transform_indices = @transform_0, window_bounds = array<i64: 8, 32>}, {pipeline_mode = #tpu.pipeline_mode<synchronous>, transform_indices = @transform_1, window_bounds = array<i64: 32, 32>}, {pipeline_mode = #tpu.pipeline_mode<synchronous>, transform_indices = @transform_2, window_bounds = array<i64: 1, 32>}, {pipeline_mode = #tpu.pipeline_mode<synchronous>, transform_indices = @transform_3, window_bounds = array<i64: 32, 32>}, {pipeline_mode = #tpu.pipeline_mode<synchronous>, transform_indices = @transform_4, window_bounds = array<i64: 1, 32>}, {pipeline_mode = #tpu.pipeline_mode<synchronous>, transform_indices = @transform_5, window_bounds = array<i64: 32, 32>}, {pipeline_mode = #tpu.pipeline_mode<synchronous>, transform_indices = @transform_6, window_bounds = array<i64: 1, 32>}, {pipeline_mode = #tpu.pipeline_mode<synchronous>, transform_indices = @transform_7, window_bounds = array<i64: 32, 128>}, {pipeline_mode = #tpu.pipeline_mode<synchronous>, transform_indices = @transform_8, window_bounds = array<i64: 1, 128>}, {transform_indices = @transform_9, window_bounds = array<i64: 8, 128>}]} {
    %c0 = arith.constant 0 : index
    %c0_0 = arith.constant 0 : index
    %0 = vector.load %arg1[%c0, %c0_0] : memref<8x32xf32, #tpu.memory_space<vmem>>, vector<8x32xf32>
    %1 = arith.truncf %0 : vector<8x32xf32> to vector<8x32xbf16>
    %c0_1 = arith.constant 0 : index
    %c0_2 = arith.constant 0 : index
    %2 = vector.load %arg2[%c0_1, %c0_2] : memref<32x32xbf16, #tpu.memory_space<vmem>>, vector<32x32xbf16>
    %cst = arith.constant dense<0.000000e+00> : vector<8x32xf32>
    %3 = tpu.matmul %1, %2, %cst {dimension_numbers = #tpu.dot_dimension_numbers<[1], [0], [0], [1], [0, 0, 1, 1], [], []>} : vector<8x32xbf16>, vector<32x32xbf16>, vector<8x32xf32> -> vector<8x32xf32>
    %c0_3 = arith.constant 0 : index
    %c0_4 = arith.constant 0 : index
    %4 = vector.load %arg3[%c0_3, %c0_4] : memref<1x32xf32, #tpu.memory_space<vmem>>, vector<1x32xf32>
    %5 = vector.broadcast %4 : vector<1x32xf32> to vector<8x32xf32>
    %6 = arith.addf %3, %5 : vector<8x32xf32>
    %7 = math.tanh %6 : vector<8x32xf32>
    %8 = arith.truncf %7 : vector<8x32xf32> to vector<8x32xbf16>
    %c0_5 = arith.constant 0 : index
    %c0_6 = arith.constant 0 : index
    %9 = vector.load %arg4[%c0_5, %c0_6] : memref<32x32xbf16, #tpu.memory_space<vmem>>, vector<32x32xbf16>
    %cst_7 = arith.constant dense<0.000000e+00> : vector<8x32xf32>
    %10 = tpu.matmul %8, %9, %cst_7 {dimension_numbers = #tpu.dot_dimension_numbers<[1], [0], [0], [1], [0, 0, 1, 1], [], []>} : vector<8x32xbf16>, vector<32x32xbf16>, vector<8x32xf32> -> vector<8x32xf32>
    %c0_8 = arith.constant 0 : index
    %c0_9 = arith.constant 0 : index
    %11 = vector.load %arg5[%c0_8, %c0_9] : memref<1x32xf32, #tpu.memory_space<vmem>>, vector<1x32xf32>
    %12 = vector.broadcast %11 : vector<1x32xf32> to vector<8x32xf32>
    %13 = arith.addf %10, %12 : vector<8x32xf32>
    %cst_10 = arith.constant 5.000000e-01 : f32
    %14 = vector.broadcast %cst_10 : f32 to vector<8x32xf32>
    %15 = arith.mulf %14, %13 : vector<8x32xf32>
    %cst_11 = arith.constant 0.707106769 : f32
    %16 = vector.broadcast %cst_11 : f32 to vector<8x32xf32>
    %17 = arith.mulf %13, %16 : vector<8x32xf32>
    %18 = math.erf %17 : vector<8x32xf32>
    %cst_12 = arith.constant 1.000000e+00 : f32
    %19 = vector.broadcast %cst_12 : f32 to vector<8x32xf32>
    %20 = arith.addf %19, %18 : vector<8x32xf32>
    %21 = arith.mulf %15, %20 : vector<8x32xf32>
    %22 = arith.truncf %21 : vector<8x32xf32> to vector<8x32xbf16>
    %c0_13 = arith.constant 0 : index
    %c0_14 = arith.constant 0 : index
    %23 = vector.load %arg6[%c0_13, %c0_14] : memref<32x32xbf16, #tpu.memory_space<vmem>>, vector<32x32xbf16>
    %cst_15 = arith.constant dense<0.000000e+00> : vector<8x32xf32>
    %24 = tpu.matmul %22, %23, %cst_15 {dimension_numbers = #tpu.dot_dimension_numbers<[1], [0], [0], [1], [0, 0, 1, 1], [], []>} : vector<8x32xbf16>, vector<32x32xbf16>, vector<8x32xf32> -> vector<8x32xf32>
    %c0_16 = arith.constant 0 : index
    %c0_17 = arith.constant 0 : index
    %25 = vector.load %arg7[%c0_16, %c0_17] : memref<1x32xf32, #tpu.memory_space<vmem>>, vector<1x32xf32>
    %26 = vector.broadcast %25 : vector<1x32xf32> to vector<8x32xf32>
    %27 = arith.addf %24, %26 : vector<8x32xf32>
    %cst_18 = arith.constant 5.000000e-01 : f32
    %28 = vector.broadcast %cst_18 : f32 to vector<8x32xf32>
    %29 = arith.mulf %28, %27 : vector<8x32xf32>
    %cst_19 = arith.constant 0.707106769 : f32
    %30 = vector.broadcast %cst_19 : f32 to vector<8x32xf32>
    %31 = arith.mulf %27, %30 : vector<8x32xf32>
    %32 = math.erf %31 : vector<8x32xf32>
    %cst_20 = arith.constant 1.000000e+00 : f32
    %33 = vector.broadcast %cst_20 : f32 to vector<8x32xf32>
    %34 = arith.addf %33, %32 : vector<8x32xf32>
    %35 = arith.mulf %29, %34 : vector<8x32xf32>
    %36 = arith.truncf %35 : vector<8x32xf32> to vector<8x32xbf16>
    %c0_21 = arith.constant 0 : index
    %c0_22 = arith.constant 0 : index
    %37 = vector.load %arg8[%c0_21, %c0_22] : memref<32x128xbf16, #tpu.memory_space<vmem>>, vector<32x128xbf16>
    %cst_23 = arith.constant dense<0.000000e+00> : vector<8x128xf32>
    %38 = tpu.matmul %36, %37, %cst_23 {dimension_numbers = #tpu.dot_dimension_numbers<[1], [0], [0], [1], [0, 0, 1, 1], [], []>} : vector<8x32xbf16>, vector<32x128xbf16>, vector<8x128xf32> -> vector<8x128xf32>
    %c0_24 = arith.constant 0 : index
    %c0_25 = arith.constant 0 : index
    %39 = vector.load %arg9[%c0_24, %c0_25] : memref<1x128xf32, #tpu.memory_space<vmem>>, vector<1x128xf32>
    %40 = vector.broadcast %39 : vector<1x128xf32> to vector<8x128xf32>
    %41 = arith.addf %38, %40 : vector<8x128xf32>
    %c0_26 = arith.constant 0 : index
    %c0_27 = arith.constant 0 : index
    %42 = vector.load %arg10[%c0_26, %c0_27] : memref<8x128xf32, #tpu.memory_space<vmem>>, vector<8x128xf32>
    tpu.vector_store %arg10[%c0_26, %c0_27], %41 {strides = array<i32>} : memref<8x128xf32, #tpu.memory_space<vmem>>, vector<8x128xf32>,
    return
  }
  func.func @transform_0(%arg0: i32) -> (i32, i32) {
    %c0_i32 = arith.constant 0 : i32
    %c0_i32_0 = arith.constant 0 : i32
    return %arg0, %c0_i32 : i32, i32
  }
  func.func @transform_1(%arg0: i32) -> (i32, i32) {
    %c0_i32 = arith.constant 0 : i32
    %c0_i32_0 = arith.constant 0 : i32
    %c0_i32_1 = arith.constant 0 : i32
    return %c0_i32, %c0_i32_0 : i32, i32
  }
  func.func @transform_2(%arg0: i32) -> (i32, i32) {
    %c0_i32 = arith.constant 0 : i32
    %c0_i32_0 = arith.constant 0 : i32
    %c0_i32_1 = arith.constant 0 : i32
    return %c0_i32, %c0_i32_0 : i32, i32
  }
  func.func @transform_3(%arg0: i32) -> (i32, i32) {
    %c0_i32 = arith.constant 0 : i32
    %c0_i32_0 = arith.constant 0 : i32
    %c0_i32_1 = arith.constant 0 : i32
    return %c0_i32, %c0_i32_0 : i32, i32
  }
  func.func @transform_4(%arg0: i32) -> (i32, i32) {
    %c0_i32 = arith.constant 0 : i32
    %c0_i32_0 = arith.constant 0 : i32
    %c0_i32_1 = arith.constant 0 : i32
    return %c0_i32, %c0_i32_0 : i32, i32
  }
  func.func @transform_5(%arg0: i32) -> (i32, i32) {
    %c0_i32 = arith.constant 0 : i32
    %c0_i32_0 = arith.constant 0 : i32
    %c0_i32_1 = arith.constant 0 : i32
    return %c0_i32, %c0_i32_0 : i32, i32
  }
  func.func @transform_6(%arg0: i32) -> (i32, i32) {
    %c0_i32 = arith.constant 0 : i32
    %c0_i32_0 = arith.constant 0 : i32
    %c0_i32_1 = arith.constant 0 : i32
    return %c0_i32, %c0_i32_0 : i32, i32
  }
  func.func @transform_7(%arg0: i32) -> (i32, i32) {
    %c0_i32 = arith.constant 0 : i32
    %c0_i32_0 = arith.constant 0 : i32
    %c0_i32_1 = arith.constant 0 : i32
    return %c0_i32, %c0_i32_0 : i32, i32
  }
  func.func @transform_8(%arg0: i32) -> (i32, i32) {
    %c0_i32 = arith.constant 0 : i32
    %c0_i32_0 = arith.constant 0 : i32
    %c0_i32_1 = arith.constant 0 : i32
    return %c0_i32, %c0_i32_0 : i32, i32
  }
  func.func @transform_9(%arg0: i32) -> (i32, i32) {
    %c0_i32 = arith.constant 0 : i32
    %c0_i32_0 = arith.constant 0 : i32
    return %arg0, %c0_i32 : i32, i32
  }
}

</mosaic_0001>

<bundles_post_ra>
// kernel: tpu_custom_call.1
= control target key start
LH: loop header
LB: loop body
LE: loop exit
PB: predicated region body
PF: predicated region fallthrough
CT: control target
= control target key end

     0   :  { %14 = vsyncpa [#allocation3], 0  ;;  %s721_s0 = inlined_call_operand.hbm [shape: f32[8,32], index: 0, kind: input, shape index: {}]   ;;  %s722_s1 = inlined_call_operand.hbm [shape: bf16[32,32], index: 1, kind: input, shape index: {}]   ;;  %s723_s2 = inlined_call_operand.vmem [shape: f32[1,32], index: 2, kind: input, shape index: {}]   ;;  %s724_s3 = inlined_call_operand.hbm [shape: bf16[32,32], index: 3, kind: input, shape index: {}]   ;;  %s725_s4 = inlined_call_operand.vmem [shape: f32[1,32], index: 4, kind: input, shape index: {}]   ;;  %s726_s5 = inlined_call_operand.hbm [shape: bf16[32,32], index: 5, kind: input, shape index: {}]   ;;  %s727_s6 = inlined_call_operand.vmem [shape: f32[1,32], index: 6, kind: input, shape index: {}]   ;;  %s728_s7 = inlined_call_operand.hbm [shape: bf16[32,128], index: 7, kind: input, shape index: {}]   ;;  %s729_s8 = inlined_call_operand.vmem [shape: f32[1,128], index: 8, kind: input, shape index: {}]   ;;  %s730_s9 = inlined_call_operand.hbm [shape: f32[8,128], index: 9, kind: output, shape index: {}]  }
   0x1   :  { %15 = vsyncpa [#allocation6], 0 }
   0x2   :  { %16 = vsyncpa [#allocation9], 0 }
   0x3   :  { %17 = vsyncpa [#allocation4], 0  ;;  %s611_s30 = smov [#allocation5]  }
   0x4   :  { %s33_s10 = sshll.u32 %s611_s30, 4  ;;  %s34_s10 = int_to_ptr.vmem [resolvable:$true] %s33_s10 }
   0x5   :  { %s491_s11 = scalar_lea.vmem %s34_s10, 256  ;;  %p496_p1 = scmp.lt.s32.totalorder %s34_s10, %s34_s10 }
   0x6   :  { %p492_p0 = scmp.ne.s32.totalorder %s34_s10, %s491_s11  ;;  %p497_p2 = scmp.lt.s32.totalorder %s491_s11, %s491_s11 }
   0x8   :  { %p498_p3 = por %p497_p2, %p496_p1 }
   0xa   :  { %p499_p4 = pnand %p498_p3, %p492_p0 }
   0xc   :  { %502 = shalt.err (!%p499_p4)
}
   0xd   :  { %s612_s12 = smov 64   ;;  %s613_s13 = smov 4  }
   0xe   :  { %39 = dma.hbm_to_vmem [thread:$0]  %s722_s1, 256, %s34_s10, [#allocation6], %s612_s12, %s612_s12, %s613_s13  }
   0xf   :  { %s614_s16 = smov [#allocation8]   ;;  %s615_s18 = smov [#allocation2]  }
  0x10   :  { %s61_s17 = sshll.u32 %s614_s16, 4  ;;  %s24_s19 = sshll.u32 %s615_s18, 4  ;;  %s62_s17 = int_to_ptr.vmem [resolvable:$true] %s61_s17  ;;  %s25_s19 = int_to_ptr.vmem [resolvable:$true] %s24_s19 }
  0x11   :  { %s511_s20 = scalar_lea.vmem %s62_s17, 256  ;;  %p516_p6 = scmp.lt.s32.totalorder %s62_s17, %s62_s17 }
  0x12   :  { %p512_p5 = scmp.ne.s32.totalorder %s62_s17, %s511_s20  ;;  %p517_p7 = scmp.lt.s32.totalorder %s511_s20, %s511_s20 }
  0x14   :  { %p518_p8 = por %p517_p7, %p516_p6 }
  0x16   :  { %p519_p9 = pnand %p518_p8, %p512_p5 }
  0x18   :  { %522 = shalt.err (!%p519_p9)
}
  0x19   :  { %67 = dma.hbm_to_vmem [thread:$0]  %s726_s5, 256, %s62_s17, [#allocation9], %s612_s12, %s612_s12, %s613_s13  }
  0x1a   :  { %s531_s1 = scalar_lea.vmem %s25_s19, 128  ;;  %p536_p11 = scmp.lt.s32.totalorder %s25_s19, %s25_s19 }
  0x1b   :  { %p532_p10 = scmp.ne.s32.totalorder %s25_s19, %s531_s1  ;;  %p537_p12 = scmp.lt.s32.totalorder %s531_s1, %s531_s1 }
  0x1d   :  { %p538_p13 = por %p537_p12, %p536_p11 }
  0x1f   :  { %p539_p0 = pnand %p538_p13, %p532_p10 }
  0x21   :  { %542 = shalt.err (!%p539_p0)
}
  0x22   :  { %27 = dma.hbm_to_vmem [thread:$0]  %s721_s0, 128, %s25_s19, [#allocation3]  }
  0x23   :  { %s616_s25 = smov [#allocation7]   ;;  %s617_s27 = smov [#allocation10]  }
  0x24   :  { %s47_s26 = sshll.u32 %s616_s25, 4  ;;  %s75_s28 = sshll.u32 %s617_s27, 4  ;;  %s48_s26 = int_to_ptr.vmem [resolvable:$true] %s47_s26  ;;  %s76_s28 = int_to_ptr.vmem [resolvable:$true] %s75_s28 }
  0x25   :  { %s551_s29 = scalar_lea.vmem %s48_s26, 256  ;;  %p556_p2 = scmp.lt.s32.totalorder %s48_s26, %s48_s26 }
  0x26   :  { %p552_p1 = scmp.ne.s32.totalorder %s48_s26, %s551_s29  ;;  %p557_p3 = scmp.lt.s32.totalorder %s551_s29, %s551_s29 }
  0x28   :  { %p558_p4 = por %p557_p3, %p556_p2 }
  0x2a   :  { %p559_p5 = pnand %p558_p4, %p552_p1 }
  0x2c   :  { %562 = shalt.err (!%p559_p5)
}
  0x2d   :  { %53 = dma.hbm_to_vmem [thread:$0]  %s724_s3, 256, %s48_s26, [#allocation6], %s612_s12, %s612_s12, %s613_s13  }
  0x2e   :  { %s571_s0 = scalar_lea.vmem %s76_s28, 256  ;;  %p576_p7 = scmp.lt.s32.totalorder %s76_s28, %s76_s28 }
  0x2f   :  { %p572_p6 = scmp.ne.s32.totalorder %s76_s28, %s571_s0  ;;  %p577_p8 = scmp.lt.s32.totalorder %s571_s0, %s571_s0 }
  0x31   :  { %p578_p9 = por %p577_p8, %p576_p7 }
  0x33   :  { %p579_p10 = pnand %p578_p9, %p572_p6 }
  0x35   :  { %582 = shalt.err (!%p579_p10)
}
  0x36   :  { %81 = dma.hbm_to_vmem [thread:$0]  %s728_s7, 256, %s76_s28, [#allocation9], %s612_s12, %s612_s12, %s613_s13  }
  0x37   :  { %603 = dma.done.wait [#allocation3], 128  }
  0x38   :  { %604 = vsyncadd [#allocation3], 4294967168 }
  0x39   :  { %605 = dma.done.wait [#allocation6], 512  }
  0x3a   :  { %606 = vsyncadd [#allocation6], 4294966784 }
  0x3b   :  { %607 = dma.done.wait [#allocation9], 512  }
  0x3c   :  { %608 = vsyncadd [#allocation9], 4294966784  ;;  %v618_v0 = vmov 0.0   ;;  %vm619_vm0 = vmmov 0   ;;  %v469_v1 = vld [vmem:[#allocation5 + $0x8] sm:$0xff]   ;;  %v470_v2 = vld [vmem:[#allocation5] sm:$0xff]  }
  0x3d   :  { %427 = vmatprep.subr.bf16.mxu0 %v618_v0  ;;  %431 = vmatprep.mubr.msk.bf16.mxu0 %vm619_vm0, %v618_v0  ;;  %v100_v3 = vld [vmem:[#allocation2] sm:$0xff]  ;;  %vm125_vm1 = vcmask 261120   ;;  %v472_v6 = vld [vmem:[#allocation7] sm:$0xff]   ;;  %v473_v15 = vld [vmem:[#allocation8 + $0x8] sm:$0xff]   ;;  %s620_s16 = smov [#allocation11]  }
  0x3e   :  { %435 = vmatprep.subr.bf16.mxu1 %v618_v0  ;;  %439 = vmatprep.mubr.msk.bf16.mxu1 %vm619_vm0, %v618_v0  ;;  %v101_v4 = vpack.c.bf16 %v100_v3, %v100_v3  ;;  %v471_v5 = vld [vmem:[#allocation7 + $0x8] sm:$0xff]   ;;  %v474_v16 = vld [vmem:[#allocation8] sm:$0xff]   ;;  %v476_v30 = vld [vmem:[#allocation10] sm:$0xff]  }
  0x3f   :  { %428 = vmatpush3.bf16.msra.mxu0 %v469_v1  ;;  %436 = vmatpush3.bf16.msra.mxu1 %v471_v5  ;;  %v399_v7 = vld [vmem:[%s723_s2] ss:$0 sm:$0xff] }
  0x40   :  { %429 = vmatprep.subr.bf16.mxu0 %v618_v0  ;;  %437 = vmatprep.subr.bf16.mxu1 %v618_v0  ;;  %v403_v17 = vld [vmem:[%s725_s4] ss:$0 sm:$0xff] }
  0x41   :  { %v475_v29 = vld [vmem:[#allocation10 + $0x8] sm:$0xff]  }
  0x42   :  { %v407_v31 = vld [vmem:[%s727_s6] ss:$0 sm:$0xff]  ;;  %s388_s6 = sshll.u32 %s620_s16, 4  ;;  %s389_s6 = int_to_ptr.vmem [resolvable:$true] %s388_s6 }
  0x43   :  { %430 = vmatpush3.bf16.msra.mxu0 %v470_v2  ;;  %438 = vmatpush3.bf16.msra.mxu1 %v472_v6  ;;  %v411_v43 = vld [vmem:[%s729_s8] ss:$0 sm:$0xff]  ;;  %s583_s17 = scalar_lea.vmem %s389_s6, 128  ;;  %p588_p12 = scmp.lt.s32.totalorder %s389_s6, %s389_s6 }
  0x44   :  { %443 = vmatprep.subr.bf16.mxu0 %v618_v0  ;;  %451 = vmatprep.subr.bf16.mxu1 %v618_v0  ;;  %p584_p11 = scmp.ne.s32.totalorder %s389_s6, %s583_s17  ;;  %p589_p13 = scmp.lt.s32.totalorder %s583_s17, %s583_s17 }
  0x46   :  { %432 = vmatmul.mubr.msk.bf16.vlgmr.msra.gmra.mxu0 %vm125_vm1, %v101_v4  ;;  %p590_p0 = por %p589_p13, %p588_p12 }
  0x47   :  { %447 = vmatprep.mubr.msk.bf16.mxu0 %vm619_vm0, %v618_v0  ;;  %444 = vmatpush3.bf16.msra.mxu0 %v473_v15 }
  0x48   :  { %445 = vmatprep.subr.bf16.mxu0 %v618_v0  ;;  %p591_p1 = pnand %p590_p0, %p584_p11 }
  0x4b   :  { %446 = vmatpush3.bf16.msra.mxu0 %v474_v16 }
 0x106   :  { %v163_v8 = vpop.f32.mrf.mxu0 }
 0x107   :  { %v164_v9 = vadd.f32 %v399_v7, %v163_v8 }
 0x108   :  { %v433_v10 = vpop.f32.mrf.mxu0 }
 0x109   :  { %477 = vtanh.f32 %v164_v9 }
 0x10a   :  { %v166_v11 = vpop.f32.mrf.mxu0 }
 0x10c   :  { %v434_v12 = vpop.f32.mrf.mxu0 }
 0x116   :  { %v478_v13 = vpop.eup %477 }
 0x117   :  { %v170_v14 = vpack.c.bf16 %v478_v13, %v478_v13 }
 0x119   :  { %440 = vmatmul.mubr.msk.bf16.vlgmr.msra.gmra.mxu1 %vm125_vm1, %v170_v14 }
 0x11a   :  { %455 = vmatprep.mubr.msk.bf16.mxu1 %vm619_vm0, %v618_v0  ;;  %452 = vmatpush3.bf16.msra.mxu1 %v475_v29 }
 0x11b   :  { %453 = vmatprep.subr.bf16.mxu1 %v618_v0 }
 0x11e   :  { %454 = vmatpush3.bf16.msra.mxu1 %v476_v30 }
 0x1d9   :  { %v231_v18 = vpop.f32.mrf.mxu1 }
 0x1da   :  { %v232_v19 = vadd.f32 %v403_v17, %v231_v18 }
 0x1db   :  { %v441_v20 = vpop.f32.mrf.mxu1 }
 0x1dc   :  { %v238_v21 = vmul.f32 0.70710677, %v232_v19  ;;  %v237_v25 = vmul.f32 0.5, %v232_v19 }
 0x1dd   :  { %v234_v22 = vpop.f32.mrf.mxu1 }
 0x1de   :  { %479 = verf.f32 %v238_v21 }
 0x1df   :  { %v442_v23 = vpop.f32.mrf.mxu1 }
 0x1eb   :  { %v480_v24 = vpop.eup %479 }
 0x1ec   :  { %v240_v26 = vadd.f32 1.0, %v480_v24 }
 0x1ee   :  { %v241_v27 = vmul.f32 %v240_v26, %v237_v25 }
 0x1f0   :  { %v242_v28 = vpack.c.bf16 %v241_v27, %v241_v27 }
 0x1f2   :  { %448 = vmatmul.mubr.msk.bf16.vlgmr.msra.gmra.mxu0 %vm125_vm1, %v242_v28 }
 0x2b2   :  { %v303_v32 = vpop.f32.mrf.mxu0 }
 0x2b3   :  { %v304_v33 = vadd.f32 %v407_v31, %v303_v32 }
 0x2b4   :  { %v449_v34 = vpop.f32.mrf.mxu0 }
 0x2b5   :  { %v310_v35 = vmul.f32 0.70710677, %v304_v33  ;;  %v309_v39 = vmul.f32 0.5, %v304_v33 }
 0x2b6   :  { %v306_v36 = vpop.f32.mrf.mxu0 }
 0x2b7   :  { %481 = verf.f32 %v310_v35 }
 0x2b8   :  { %v450_v37 = vpop.f32.mrf.mxu0 }
 0x2c4   :  { %v482_v38 = vpop.eup %481 }
 0x2c5   :  { %v312_v40 = vadd.f32 1.0, %v482_v38 }
 0x2c7   :  { %v313_v41 = vmul.f32 %v312_v40, %v309_v39 }
 0x2c9   :  { %v314_v42 = vpack.c.bf16 %v313_v41, %v313_v41 }
 0x2cb   :  { %456 = vmatmul.mubr.msk.bf16.vlgmr.msra.gmra.mxu1 %vm125_vm1, %v314_v42 }
 0x38b   :  { %v375_v44 = vpop.f32.mrf.mxu1 }
 0x38c   :  { %v376_v45 = vadd.f32 %v411_v43, %v375_v44 }
 0x38d   :  { %v457_v46 = vpop.f32.mrf.mxu1 }
 0x38e   :  { %381 = vst [vmem:[#allocation11] sm:$0xff] %v376_v45 }
 0x38f   :  { %v378_v47 = vpop.f32.mrf.mxu1 }
 0x390   :  { %594 = shalt.err (!%p591_p1)
}
 0x391   :  { %391 = dma.vmem_to_hbm [thread:$0]  %s389_s6, 128, %s730_s9, [#allocation4]   ;;  %v458_v48 = vpop.f32.mrf.mxu1 }
 0x392   :  { %609 = dma.done.wait [#allocation4], 128  }
 0x393   :  { %610 = vsyncadd [#allocation4], 4294967168 }
 0x394   :  { %395 = vsyncpa [#allocation3], 1 }
 0x395   :  { %396 = vsyncpa [#allocation6], 1 }
 0x396   :  { %397 = vsyncpa [#allocation9], 1 }
 0x397   :  { %398 = vsyncpa [#allocation4], 1 }

// kernel: tpu_custom_call.1
= control target key start
LH: loop header
LB: loop body
LE: loop exit
PB: predicated region body
PF: predicated region fallthrough
CT: control target
= control target key end

     0   :  { %14 = vsyncpa [#allocation3], 0  ;;  %s721_s0 = inlined_call_operand.hbm [shape: f32[8,32], index: 0, kind: input, shape index: {}]   ;;  %s722_s1 = inlined_call_operand.hbm [shape: bf16[32,32], index: 1, kind: input, shape index: {}]   ;;  %s723_s2 = inlined_call_operand.vmem [shape: f32[1,32], index: 2, kind: input, shape index: {}]   ;;  %s724_s3 = inlined_call_operand.hbm [shape: bf16[32,32], index: 3, kind: input, shape index: {}]   ;;  %s725_s4 = inlined_call_operand.vmem [shape: f32[1,32], index: 4, kind: input, shape index: {}]   ;;  %s726_s5 = inlined_call_operand.hbm [shape: bf16[32,32], index: 5, kind: input, shape index: {}]   ;;  %s727_s6 = inlined_call_operand.vmem [shape: f32[1,32], index: 6, kind: input, shape index: {}]   ;;  %s728_s7 = inlined_call_operand.hbm [shape: bf16[32,128], index: 7, kind: input, shape index: {}]   ;;  %s729_s8 = inlined_call_operand.vmem [shape: f32[1,128], index: 8, kind: input, shape index: {}]   ;;  %s730_s9 = inlined_call_operand.hbm [shape: f32[8,128], index: 9, kind: output, shape index: {}]  }
   0x1   :  { %15 = vsyncpa [#allocation6], 0 }
   0x2   :  { %16 = vsyncpa [#allocation9], 0 }
   0x3   :  { %17 = vsyncpa [#allocation4], 0  ;;  %s611_s30 = smov [#allocation5]  }
   0x4   :  { %s33_s10 = sshll.u32 %s611_s30, 4  ;;  %s34_s10 = int_to_ptr.vmem [resolvable:$true] %s33_s10 }
   0x5   :  { %s491_s11 = scalar_lea.vmem %s34_s10, 256  ;;  %p496_p1 = scmp.lt.s32.totalorder %s34_s10, %s34_s10 }
   0x6   :  { %p492_p0 = scmp.ne.s32.totalorder %s34_s10, %s491_s11  ;;  %p497_p2 = scmp.lt.s32.totalorder %s491_s11, %s491_s11 }
   0x8   :  { %p498_p3 = por %p497_p2, %p496_p1 }
   0xa   :  { %p499_p4 = pnand %p498_p3, %p492_p0 }
   0xc   :  { %502 = shalt.err (!%p499_p4)
}
   0xd   :  { %s612_s12 = smov 64   ;;  %s613_s13 = smov 4  }
   0xe   :  { %39 = dma.hbm_to_vmem [thread:$0]  %s722_s1, 256, %s34_s10, [#allocation6], %s612_s12, %s612_s12, %s613_s13  }
   0xf   :  { %s614_s16 = smov [#allocation8]   ;;  %s615_s18 = smov [#allocation2]  }
  0x10   :  { %s61_s17 = sshll.u32 %s614_s16, 4  ;;  %s24_s19 = sshll.u32 %s615_s18, 4  ;;  %s62_s17 = int_to_ptr.vmem [resolvable:$true] %s61_s17  ;;  %s25_s19 = int_to_ptr.vmem [resolvable:$true] %s24_s19 }
  0x11   :  { %s511_s20 = scalar_lea.vmem %s62_s17, 256  ;;  %p516_p6 = scmp.lt.s32.totalorder %s62_s17, %s62_s17 }
  0x12   :  { %p512_p5 = scmp.ne.s32.totalorder %s62_s17, %s511_s20  ;;  %p517_p7 = scmp.lt.s32.totalorder %s511_s20, %s511_s20 }
  0x14   :  { %p518_p8 = por %p517_p7, %p516_p6 }
  0x16   :  { %p519_p9 = pnand %p518_p8, %p512_p5 }
  0x18   :  { %522 = shalt.err (!%p519_p9)
}
  0x19   :  { %67 = dma.hbm_to_vmem [thread:$0]  %s726_s5, 256, %s62_s17, [#allocation9], %s612_s12, %s612_s12, %s613_s13  }
  0x1a   :  { %s531_s1 = scalar_lea.vmem %s25_s19, 128  ;;  %p536_p11 = scmp.lt.s32.totalorder %s25_s19, %s25_s19 }
  0x1b   :  { %p532_p10 = scmp.ne.s32.totalorder %s25_s19, %s531_s1  ;;  %p537_p12 = scmp.lt.s32.totalorder %s531_s1, %s531_s1 }
  0x1d   :  { %p538_p13 = por %p537_p12, %p536_p11 }
  0x1f   :  { %p539_p0 = pnand %p538_p13, %p532_p10 }
  0x21   :  { %542 = shalt.err (!%p539_p0)
}
  0x22   :  { %27 = dma.hbm_to_vmem [thread:$0]  %s721_s0, 128, %s25_s19, [#allocation3]  }
  0x23   :  { %s616_s25 = smov [#allocation7]   ;;  %s617_s27 = smov [#allocation10]  }
  0x24   :  { %s47_s26 = sshll.u32 %s616_s25, 4  ;;  %s75_s28 = sshll.u32 %s617_s27, 4  ;;  %s48_s26 = int_to_ptr.vmem [resolvable:$true] %s47_s26  ;;  %s76_s28 = int_to_ptr.vmem [resolvable:$true] %s75_s28 }
  0x25   :  { %s551_s29 = scalar_lea.vmem %s48_s26, 256  ;;  %p556_p2 = scmp.lt.s32.totalorder %s48_s26, %s48_s26 }
  0x26   :  { %p552_p1 = scmp.ne.s32.totalorder %s48_s26, %s551_s29  ;;  %p557_p3 = scmp.lt.s32.totalorder %s551_s29, %s551_s29 }
  0x28   :  { %p558_p4 = por %p557_p3, %p556_p2 }
  0x2a   :  { %p559_p5 = pnand %p558_p4, %p552_p1 }
  0x2c   :  { %562 = shalt.err (!%p559_p5)
}
  0x2d   :  { %53 = dma.hbm_to_vmem [thread:$0]  %s724_s3, 256, %s48_s26, [#allocation6], %s612_s12, %s612_s12, %s613_s13  }
  0x2e   :  { %s571_s0 = scalar_lea.vmem %s76_s28, 256  ;;  %p576_p7 = scmp.lt.s32.totalorder %s76_s28, %s76_s28 }
  0x2f   :  { %p572_p6 = scmp.ne.s32.totalorder %s76_s28, %s571_s0  ;;  %p577_p8 = scmp.lt.s32.totalorder %s571_s0, %s571_s0 }
  0x31   :  { %p578_p9 = por %p577_p8, %p576_p7 }
  0x33   :  { %p579_p10 = pnand %p578_p9, %p572_p6 }
  0x35   :  { %582 = shalt.err (!%p579_p10)
}
  0x36   :  { %81 = dma.hbm_to_vmem [thread:$0]  %s728_s7, 256, %s76_s28, [#allocation9], %s612_s12, %s612_s12, %s613_s13  }
  0x37   :  { %603 = dma.done.wait [#allocation3], 128  }
  0x38   :  { %604 = vsyncadd [#allocation3], 4294967168 }
  0x39   :  { %605 = dma.done.wait [#allocation6], 512  }
  0x3a   :  { %606 = vsyncadd [#allocation6], 4294966784 }
  0x3b   :  { %607 = dma.done.wait [#allocation9], 512  }
  0x3c   :  { %608 = vsyncadd [#allocation9], 4294966784  ;;  %v618_v0 = vmov 0.0   ;;  %vm619_vm0 = vmmov 0   ;;  %v469_v1 = vld [vmem:[#allocation5 + $0x8] sm:$0xff]   ;;  %v470_v2 = vld [vmem:[#allocation5] sm:$0xff]  }
  0x3d   :  { %427 = vmatprep.subr.bf16.mxu0 %v618_v0  ;;  %431 = vmatprep.mubr.msk.bf16.mxu0 %vm619_vm0, %v618_v0  ;;  %v100_v3 = vld [vmem:[#allocation2] sm:$0xff]  ;;  %vm125_vm1 = vcmask 261120   ;;  %v472_v6 = vld [vmem:[#allocation7] sm:$0xff]   ;;  %v473_v15 = vld [vmem:[#allocation8 + $0x8] sm:$0xff]   ;;  %s620_s16 = smov [#allocation11]  }
  0x3e   :  { %435 = vmatprep.subr.bf16.mxu1 %v618_v0  ;;  %439 = vmatprep.mubr.msk.bf16.mxu1 %vm619_vm0, %v618_v0  ;;  %v101_v4 = vpack.c.bf16 %v100_v3, %v100_v3  ;;  %v471_v5 = vld [vmem:[#allocation7 + $0x8] sm:$0xff]   ;;  %v474_v16 = vld [vmem:[#allocation8] sm:$0xff]   ;;  %v476_v30 = vld [vmem:[#allocation10] sm:$0xff]  }
  0x3f   :  { %428 = vmatpush3.bf16.msra.mxu0 %v469_v1  ;;  %436 = vmatpush3.bf16.msra.mxu1 %v471_v5  ;;  %v399_v7 = vld [vmem:[%s723_s2] ss:$0 sm:$0xff] }
  0x40   :  { %429 = vmatprep.subr.bf16.mxu0 %v618_v0  ;;  %437 = vmatprep.subr.bf16.mxu1 %v618_v0  ;;  %v403_v17 = vld [vmem:[%s725_s4] ss:$0 sm:$0xff] }
  0x41   :  { %v475_v29 = vld [vmem:[#allocation10 + $0x8] sm:$0xff]  }
  0x42   :  { %v407_v31 = vld [vmem:[%s727_s6] ss:$0 sm:$0xff]  ;;  %s388_s6 = sshll.u32 %s620_s16, 4  ;;  %s389_s6 = int_to_ptr.vmem [resolvable:$true] %s388_s6 }
  0x43   :  { %430 = vmatpush3.bf16.msra.mxu0 %v470_v2  ;;  %438 = vmatpush3.bf16.msra.mxu1 %v472_v6  ;;  %v411_v43 = vld [vmem:[%s729_s8] ss:$0 sm:$0xff]  ;;  %s583_s17 = scalar_lea.vmem %s389_s6, 128  ;;  %p588_p12 = scmp.lt.s32.totalorder %s389_s6, %s389_s6 }
  0x44   :  { %443 = vmatprep.subr.bf16.mxu0 %v618_v0  ;;  %451 = vmatprep.subr.bf16.mxu1 %v618_v0  ;;  %p584_p11 = scmp.ne.s32.totalorder %s389_s6, %s583_s17  ;;  %p589_p13 = scmp.lt.s32.totalorder %s583_s17, %s583_s17 }
  0x46   :  { %432 = vmatmul.mubr.msk.bf16.vlgmr.msra.gmra.mxu0 %vm125_vm1, %v101_v4  ;;  %p590_p0 = por %p589_p13, %p588_p12 }
  0x47   :  { %447 = vmatprep.mubr.msk.bf16.mxu0 %vm619_vm0, %v618_v0  ;;  %444 = vmatpush3.bf16.msra.mxu0 %v473_v15 }
  0x48   :  { %445 = vmatprep.subr.bf16.mxu0 %v618_v0  ;;  %p591_p1 = pnand %p590_p0, %p584_p11 }
  0x4b   :  { %446 = vmatpush3.bf16.msra.mxu0 %v474_v16 }
 0x106   :  { %v163_v8 = vpop.f32.mrf.mxu0 }
 0x107   :  { %v164_v9 = vadd.f32 %v399_v7, %v163_v8 }
 0x108   :  { %v433_v10 = vpop.f32.mrf.mxu0 }
 0x109   :  { %477 = vtanh.f32 %v164_v9 }
 0x10a   :  { %v166_v11 = vpop.f32.mrf.mxu0 }
 0x10c   :  { %v434_v12 = vpop.f32.mrf.mxu0 }
 0x116   :  { %v478_v13 = vpop.eup %477 }
 0x117   :  { %v170_v14 = vpack.c.bf16 %v478_v13, %v478_v13 }
 0x119   :  { %440 = vmatmul.mubr.msk.bf16.vlgmr.msra.gmra.mxu1 %vm125_vm1, %v170_v14 }
 0x11a   :  { %455 = vmatprep.mubr.msk.bf16.mxu1 %vm619_vm0, %v618_v0  ;;  %452 = vmatpush3.bf16.msra.mxu1 %v475_v29 }
 0x11b   :  { %453 = vmatprep.subr.bf16.mxu1 %v618_v0 }
 0x11e   :  { %454 = vmatpush3.bf16.msra.mxu1 %v476_v30 }
 0x1d9   :  { %v231_v18 = vpop.f32.mrf.mxu1 }
 0x1da   :  { %v232_v19 = vadd.f32 %v403_v17, %v231_v18 }
 0x1db   :  { %v441_v20 = vpop.f32.mrf.mxu1 }
 0x1dc   :  { %v238_v21 = vmul.f32 0.70710677, %v232_v19  ;;  %v237_v25 = vmul.f32 0.5, %v232_v19 }
 0x1dd   :  { %v234_v22 = vpop.f32.mrf.mxu1 }
 0x1de   :  { %479 = verf.f32 %v238_v21 }
 0x1df   :  { %v442_v23 = vpop.f32.mrf.mxu1 }
 0x1eb   :  { %v480_v24 = vpop.eup %479 }
 0x1ec   :  { %v240_v26 = vadd.f32 1.0, %v480_v24 }
 0x1ee   :  { %v241_v27 = vmul.f32 %v240_v26, %v237_v25 }
 0x1f0   :  { %v242_v28 = vpack.c.bf16 %v241_v27, %v241_v27 }
 0x1f2   :  { %448 = vmatmul.mubr.msk.bf16.vlgmr.msra.gmra.mxu0 %vm125_vm1, %v242_v28 }
 0x2b2   :  { %v303_v32 = vpop.f32.mrf.mxu0 }
 0x2b3   :  { %v304_v33 = vadd.f32 %v407_v31, %v303_v32 }
 0x2b4   :  { %v449_v34 = vpop.f32.mrf.mxu0 }
 0x2b5   :  { %v310_v35 = vmul.f32 0.70710677, %v304_v33  ;;  %v309_v39 = vmul.f32 0.5, %v304_v33 }
 0x2b6   :  { %v306_v36 = vpop.f32.mrf.mxu0 }
 0x2b7   :  { %481 = verf.f32 %v310_v35 }
 0x2b8   :  { %v450_v37 = vpop.f32.mrf.mxu0 }
 0x2c4   :  { %v482_v38 = vpop.eup %481 }
 0x2c5   :  { %v312_v40 = vadd.f32 1.0, %v482_v38 }
 0x2c7   :  { %v313_v41 = vmul.f32 %v312_v40, %v309_v39 }
 0x2c9   :  { %v314_v42 = vpack.c.bf16 %v313_v41, %v313_v41 }
 0x2cb   :  { %456 = vmatmul.mubr.msk.bf16.vlgmr.msra.gmra.mxu1 %vm125_vm1, %v314_v42 }
 0x38b   :  { %v375_v44 = vpop.f32.mrf.mxu1 }
 0x38c   :  { %v376_v45 = vadd.f32 %v411_v43, %v375_v44 }
 0x38d   :  { %v457_v46 = vpop.f32.mrf.mxu1 }
 0x38e   :  { %381 = vst [vmem:[#allocation11] sm:$0xff] %v376_v45 }
 0x38f   :  { %v378_v47 = vpop.f32.mrf.mxu1 }
 0x390   :  { %594 = shalt.err (!%p591_p1)
}
 0x391   :  { %391 = dma.vmem_to_hbm [thread:$0]  %s389_s6, 128, %s730_s9, [#allocation4]   ;;  %v458_v48 = vpop.f32.mrf.mxu1 }
 0x392   :  { %609 = dma.done.wait [#allocation4], 128  }
 0x393   :  { %610 = vsyncadd [#allocation4], 4294967168 }
 0x394   :  { %395 = vsyncpa [#allocation3], 1 }
 0x395   :  { %396 = vsyncpa [#allocation6], 1 }
 0x396   :  { %397 = vsyncpa [#allocation9], 1 }
 0x397   :  { %398 = vsyncpa [#allocation4], 1 }

</bundles_post_ra>
